<compile_context>
chip_gen: v7x
topology: tpu7x:2x2x1
jax: 0.10.0
libtpu: 0.0.40
codegen_flags: <defaults>
</compile_context>

<pallas_src>
import functools
import math

import jax
import jax.numpy as jnp
from jax.experimental import pallas as pl
from jax.experimental.pallas import tpu as pltpu


def build_fixed_embedding_table(c_in: int, d_model: int) -> jnp.ndarray:
    """Deterministic sinusoidal table, identical to the PyTorch __init__ (even d_model)."""
    assert d_model % 2 == 0, "FixedEmbedding requires an even d_model (sin/cos interleave)."
    position = jnp.arange(c_in, dtype=jnp.float32)[:, None]                 # (c_in, 1)
    div_term = jnp.exp(
        jnp.arange(0, d_model, 2, dtype=jnp.float32)
        * -(math.log(10000.0) / d_model)
    )                                                                       # (d_model//2,)
    ang = position * div_term                                               # (c_in, d_model//2)
    # interleave: even columns = sin, odd columns = cos
    w = jnp.stack([jnp.sin(ang), jnp.cos(ang)], axis=-1).reshape(c_in, d_model)
    return w.astype(jnp.float32)


def _embed_kernel(idx_ref, table_ref, out_ref, *, c_in: int, pack: int):
    # idx_ref   : (tr, pack)              int32  raw token indices (clamp folded in here)
    # table_ref : (pack*c_in, ndim_pad)   f32    block-diagonal table, VMEM-resident
    # out_ref   : (tr, ndim_pad)          f32    lane-dense output tile
    idx = jnp.clip(idx_ref[...], 0, c_in - 1)                   # nn.Embedding-safe clamp
    tr = idx.shape[0]
    kdim = table_ref.shape[0]                                    # pack * c_in

    col = jax.lax.broadcasted_iota(jnp.int32, (tr, kdim), 1)     # (tr, pack*c_in)
    # Slot j hits the j-th diagonal block; j*c_in is a compile-time constant so the
    # add folds into the VPU compare (spare VALU slots, kernel is store/DMA bound).
    hit = col == idx[:, 0:1]
    for j in range(1, pack):                                     # pack is static & small
        hit = jnp.logical_or(hit, col == idx[:, j:j + 1] + j * c_in)
    one_hot = hit.astype(table_ref.dtype)                        # (tr, pack*c_in)

    # one-hot @ block-diag(table) -> exact packed row gather on the MXU, lane-dense out
    out_ref[...] = jnp.dot(one_hot, table_ref[...],
                           preferred_element_type=jnp.float32)


def _pack_table(table: jnp.ndarray):
    """Build the packed / lane-padded block-diagonal table ONCE (frozen weights)."""
    c_in, d_model = table.shape
    pack = 128 // d_model if (d_model < 128 and 128 % d_model == 0) else 1
    ndim = pack * d_model
    ndim_pad = pl.cdiv(ndim, 128) * 128            # unmasked 128-lane stores always
    table_bd = table if pack == 1 else jnp.kron(jnp.eye(pack, dtype=table.dtype), table)
    if ndim_pad != ndim:
        table_bd = jnp.pad(table_bd, ((0, 0), (0, ndim_pad - ndim)))
    return pack, ndim_pad, jax.device_put(table_bd)


def _vmem_estimate(tr: int, pack: int, c_in: int, ndim_pad: int) -> int:
    """Full VMEM footprint: double-buffered idx/out tiles (idx lane-padded to 128),
    the one-hot matmul LHS intermediate (lane-padded), and the resident table."""
    idx_tile = tr * max(pack, 128) * 4
    out_tile = tr * ndim_pad * 4
    one_hot = tr * (pl.cdiv(pack * c_in, 128) * 128) * 4
    table_res = (pl.cdiv(pack * c_in, 8) * 8) * ndim_pad * 4
    return 2 * idx_tile + 2 * out_tile + one_hot + table_res


def _fixed_embedding_impl(x, table_bd, *, c_in, d_model, pack, ndim_pad, block_tokens):
    orig_shape = x.shape
    idx = x.reshape(-1).astype(jnp.int32)
    n = idx.shape[0]

    rows = pl.cdiv(n, pack)                                      # packed rows of data

    # Row tile selection:
    #  - big: >= block_tokens tokens / step so the out slab amortizes step overhead,
    #  - <= ~4 MiB of output per buffer,
    #  - >= 4 grid steps for large inputs (keeps both v7x TCs busy + pipelining),
    #  - total VMEM footprint under a 40 MiB budget (shrink if needed).
    tr_tokens = max(8, (block_tokens // pack) // 8 * 8)
    tr_vmem = max(8, ((4 * 1024 * 1024) // (ndim_pad * 4)) // 8 * 8)
    tr_steps = max(8, pl.cdiv(pl.cdiv(rows, 4), 8) * 8)
    tr = min(tr_tokens, tr_vmem, tr_steps)
    while _vmem_estimate(tr, pack, c_in, ndim_pad) > 40 * 1024 * 1024 and tr > 8:
        tr = max(8, (tr // 2) // 8 * 8)

    rows_pad = pl.cdiv(rows, tr) * tr
    n_pad = rows_pad * pack
    if n_pad != n:
        idx = jnp.pad(idx, (0, n_pad - n))                       # padded tail gathers row 0
    idx2d = idx.reshape(rows_pad, pack)

    kdim = pack * c_in
    vmem_bytes = _vmem_estimate(tr, pack, c_in, ndim_pad)
    vmem_limit = int(min(48 * 1024 * 1024,                        # headroom on v7x's 64 MiB
                         max(int(1.5 * vmem_bytes), 8 * 1024 * 1024)))

    cost = pl.CostEstimate(
        flops=2 * rows_pad * kdim * ndim_pad,
        transcendentals=0,
        bytes_accessed=rows_pad * pack * 4 + kdim * ndim_pad * 4 + rows_pad * ndim_pad * 4,
    )

    kernel = functools.partial(_embed_kernel, c_in=c_in, pack=pack)

    out = pl.pallas_call(
        kernel,
        out_shape=jax.ShapeDtypeStruct((rows_pad, ndim_pad), jnp.float32),
        grid_spec=pltpu.PrefetchScalarGridSpec(
            num_scalar_prefetch=0,
            grid=(rows_pad // tr,),
            in_specs=[
                pl.BlockSpec((tr, pack), lambda i: (i, 0)),               # index tile
                pl.BlockSpec(memory_space=pltpu.MemorySpace.VMEM),        # resident table
            ],
            out_specs=pl.BlockSpec((tr, ndim_pad), lambda i: (i, 0)),     # lane-dense tile
        ),
        compiler_params=pltpu.CompilerParams(
            dimension_semantics=("parallel",),
            vmem_limit_bytes=vmem_limit,
        ),
        cost_estimate=cost,
    )(idx2d, table_bd)

    # Un-pack / un-pad, then restore original layout.
    if pack > 1:
        out = out.reshape(rows_pad * pack, d_model)
    else:
        out = out[:, :d_model]
    return out[:n].reshape(*orig_shape, d_model)


def make_fixed_embedding(c_in: int, d_model: int, *, block_tokens: int = 8192):
    """Mirrors FixedEmbedding(c_in, d_model): builds the frozen table and its packed
    block-diagonal copy once, returns (jitted forward, raw table)."""
    table = build_fixed_embedding_table(c_in, d_model)
    pack, ndim_pad, table_bd = _pack_table(table)

    @jax.jit
    def embed(x):
        return _fixed_embedding_impl(
            x, table_bd, c_in=c_in, d_model=d_model,
            pack=pack, ndim_pad=ndim_pad, block_tokens=block_tokens)

    return embed, table


if __name__ == "__main__":
    # Small shapes consistent with the module: c_in "vocab" = 16, d_model = 32,
    # input indices of shape (batch=2, seq=8).
    c_in, d_model = 16, 32
    B, L = 2, 8

    embed, table = make_fixed_embedding(c_in, d_model)

    key = jax.random.PRNGKey(0)
    x = jax.random.randint(key, (B, L), minval=0, maxval=c_in, dtype=jnp.int32)

    y = jax.block_until_ready(embed(x))

    # reference: plain gather of the frozen table
    y_ref = jnp.take(table, x.reshape(-1), axis=0).reshape(B, L, d_model)
    assert y.shape == (B, L, d_model)
    assert y.dtype == jnp.float32
    assert jnp.allclose(y, y_ref, atol=1e-6), "mismatch vs reference gather"

    print("KERNEL_OK")
</pallas_src>

<mosaic_0001>
module attributes {stable_mosaic.version = 11 : i64} {
  func.func @_embed_kernel(%arg0: i32, %arg1: memref<8x4xi32, #tpu.memory_space<vmem>>, %arg2: memref<64x128xf32, #tpu.memory_space<vmem>>, %arg3: memref<8x128xf32, #tpu.memory_space<vmem>>) attributes {dimension_semantics = [#tpu.dimension_semantics<parallel>], iteration_bounds = array<i64: 1>, scalar_prefetch = 0 : i64, scratch_operands = 0 : i64, tpu.core_type = #tpu.core_type<tc>, window_params = [{transform_indices = @transform_0, window_bounds = array<i64: 8, 4>}, {pipeline_mode = #tpu.pipeline_mode<synchronous>, transform_indices = @transform_1, window_bounds = array<i64: 64, 128>}, {transform_indices = @transform_2, window_bounds = array<i64: 8, 128>}]} {
    %c0 = arith.constant 0 : index
    %c0_0 = arith.constant 0 : index
    %0 = vector.load %arg1[%c0, %c0_0] : memref<8x4xi32, #tpu.memory_space<vmem>>, vector<8x4xi32>
    %c0_i32 = arith.constant 0 : i32
    %c15_i32 = arith.constant 15 : i32
    %1 = vector.broadcast %c0_i32 : i32 to vector<8x4xi32>
    %2 = arith.maxsi %1, %0 : vector<8x4xi32>
    %3 = vector.broadcast %c15_i32 : i32 to vector<8x4xi32>
    %4 = arith.minsi %3, %2 : vector<8x4xi32>
    %5 = tpu.iota {dimensions = array<i32: 1>} : vector<8x64xi32>
    %6 = vector.extract_strided_slice %4 {offsets = [0, 0], sizes = [8, 1], strides = [1, 1]} : vector<8x4xi32> to vector<8x1xi32>
    %7 = vector.broadcast %6 : vector<8x1xi32> to vector<8x64xi32>
    %8 = arith.cmpi eq, %5, %7 : vector<8x64xi32>
    %9 = vector.extract_strided_slice %4 {offsets = [0, 1], sizes = [8, 1], strides = [1, 1]} : vector<8x4xi32> to vector<8x1xi32>
    %c16_i32 = arith.constant 16 : i32
    %10 = vector.broadcast %c16_i32 : i32 to vector<8x1xi32>
    %11 = arith.addi %9, %10 : vector<8x1xi32>
    %12 = vector.broadcast %11 : vector<8x1xi32> to vector<8x64xi32>
    %13 = arith.cmpi eq, %5, %12 : vector<8x64xi32>
    %14 = arith.ori %8, %13 : vector<8x64xi1>
    %15 = vector.extract_strided_slice %4 {offsets = [0, 2], sizes = [8, 1], strides = [1, 1]} : vector<8x4xi32> to vector<8x1xi32>
    %c32_i32 = arith.constant 32 : i32
    %16 = vector.broadcast %c32_i32 : i32 to vector<8x1xi32>
    %17 = arith.addi %15, %16 : vector<8x1xi32>
    %18 = vector.broadcast %17 : vector<8x1xi32> to vector<8x64xi32>
    %19 = arith.cmpi eq, %5, %18 : vector<8x64xi32>
    %20 = arith.ori %14, %19 : vector<8x64xi1>
    %21 = vector.extract_strided_slice %4 {offsets = [0, 3], sizes = [8, 1], strides = [1, 1]} : vector<8x4xi32> to vector<8x1xi32>
    %c48_i32 = arith.constant 48 : i32
    %22 = vector.broadcast %c48_i32 : i32 to vector<8x1xi32>
    %23 = arith.addi %21, %22 : vector<8x1xi32>
    %24 = vector.broadcast %23 : vector<8x1xi32> to vector<8x64xi32>
    %25 = arith.cmpi eq, %5, %24 : vector<8x64xi32>
    %26 = arith.ori %20, %25 : vector<8x64xi1>
    %27 = arith.extui %26 : vector<8x64xi1> to vector<8x64xi32>
    %28 = arith.sitofp %27 : vector<8x64xi32> to vector<8x64xf32>
    %c0_1 = arith.constant 0 : index
    %c0_2 = arith.constant 0 : index
    %29 = vector.load %arg2[%c0_1, %c0_2] : memref<64x128xf32, #tpu.memory_space<vmem>>, vector<64x128xf32>
    %cst = arith.constant dense<0.000000e+00> : vector<8x128xf32>
    %30 = tpu.matmul %28, %29, %cst {dimension_numbers = #tpu.dot_dimension_numbers<[1], [0], [0], [1], [0, 0, 1, 1], [], []>} : vector<8x64xf32>, vector<64x128xf32>, vector<8x128xf32> -> vector<8x128xf32>
    %c0_3 = arith.constant 0 : index
    %c0_4 = arith.constant 0 : index
    %31 = vector.load %arg3[%c0_3, %c0_4] : memref<8x128xf32, #tpu.memory_space<vmem>>, vector<8x128xf32>
    tpu.vector_store %arg3[%c0_3, %c0_4], %30 {strides = array<i32>} : memref<8x128xf32, #tpu.memory_space<vmem>>, vector<8x128xf32>,
    return
  }
  func.func @transform_0(%arg0: i32) -> (i32, i32) {
    %c0_i32 = arith.constant 0 : i32
    %c0_i32_0 = arith.constant 0 : i32
    return %arg0, %c0_i32 : i32, i32
  }
  func.func @transform_1(%arg0: i32) -> (i32, i32) {
    %c0_i32 = arith.constant 0 : i32
    %c0_i32_0 = arith.constant 0 : i32
    %c0_i32_1 = arith.constant 0 : i32
    return %c0_i32, %c0_i32_0 : i32, i32
  }
  func.func @transform_2(%arg0: i32) -> (i32, i32) {
    %c0_i32 = arith.constant 0 : i32
    %c0_i32_0 = arith.constant 0 : i32
    return %arg0, %c0_i32 : i32, i32
  }
}

</mosaic_0001>

<bundles_post_ra>
// kernel: embed.1
= control target key start
LH: loop header
LB: loop body
LE: loop exit
PB: predicated region body
PF: predicated region fallthrough
CT: control target
= control target key end

     0   :  { %7 = vsyncpa [#allocation3], 0  ;;  %s225_s9 = smov [#allocation2]   ;;  %s268_s0 = inlined_call_operand.vmem [shape: s32[8,4], index: 0, kind: input, shape index: {}]   ;;  %s269_s1 = inlined_call_operand.hbm [shape: f32[64,128], index: 1, kind: input, shape index: {}]   ;;  %s270_s2 = inlined_call_operand.vmem [shape: f32[8,128], index: 2, kind: output, shape index: {}]  }
   0x1   :  { %s15_s10 = sshll.u32 %s225_s9, 4  ;;  %s201_s13 = scalar_lea.hbm %s269_s1, 1024  ;;  %s16_s10 = int_to_ptr.vmem [resolvable:$true] %s15_s10 }
   0x2   :  { %p202_p0 = scmp.ne.s32.totalorder %s269_s1, %s201_s13  ;;  %p205_p1 = scmp.lt.u32.totalorder %s201_s13, %s269_s1 }
   0x4   :  { %p207_p2 = pnand %p205_p1, %p202_p0 }
   0x6   :  { %210 = shalt.err (!%p207_p2)
}
   0x7   :  { %s211_s18 = scalar_lea.vmem %s16_s10, 1024  ;;  %p216_p4 = scmp.lt.s32.totalorder %s16_s10, %s16_s10 }
   0x8   :  { %p212_p3 = scmp.ne.s32.totalorder %s16_s10, %s211_s18  ;;  %p217_p5 = scmp.lt.s32.totalorder %s211_s18, %s211_s18 }
   0xa   :  { %p218_p6 = por %p217_p5, %p216_p4 }
   0xc   :  { %p219_p7 = pnand %p218_p6, %p212_p3 }
   0xe   :  { %222 = shalt.err (!%p219_p7)
}
   0xf   :  { %s226_s19 = smov 128   ;;  %s227_s20 = smov 8  }
  0x10   :  { %21 = dma.hbm_to_vmem [thread:$0]  %s269_s1, 1024, %s16_s10, [#allocation3], %s226_s19, %s226_s19, %s227_s20  }
  0x11   :  { %223 = dma.done.wait [#allocation3], 1024  }
  0x12   :  { %224 = vsyncadd [#allocation3], 4294966272  ;;  %v228_v0 = vmov 0   ;;  %v229_v1 = vmov 2   ;;  %v230_v2 = vmov 0.0|0.0   ;;  %v25_v3 = vld [vmem:[%s268_s0] sm:$0xff]  ;;  %v30_v24 = vlaneseq }
  0x13   :  { %196 = vset.pattern.permute.xlu0 %v228_v0  ;;  %198 = vset.pattern.permute.xlu1 %v229_v1  ;;  %v56_v4 = vld [vmem:[#allocation2] sm:$0xff]  ;;  %v57_v5 = vld [vmem:[#allocation2 + $0x8] sm:$0xff]  ;;  %vm26_vm0 = vcmp.gt.s32.totalorder %v25_v3, 0  ;;  %v58_v7 = vld [vmem:[#allocation2 + $0x10] sm:$0xff]  ;;  %v231_v18 = vmov 1   ;;  %v232_v21 = vmov 3  }
  0x14   :  { %174 = vmatprep.subr.bf16.mxu0 %v230_v2  ;;  %v175_v6 = vpack.c.bf16 %v57_v5, %v56_v4  ;;  %v59_v8 = vld [vmem:[#allocation2 + $0x18] sm:$0xff]  ;;  %v27_v9 = vsel %vm26_vm0, %v25_v3, 0  ;;  %v60_v13 = vld [vmem:[#allocation2 + $0x20] sm:$0xff]  ;;  %v61_v14 = vld [vmem:[#allocation2 + $0x28] sm:$0xff]  ;;  %vm233_vm2 = vmmov 0   ;;  %v234_v23 = vmov 0.0  }
  0x15   :  { %vm28_vm1 = vcmp.lt.s32.totalorder %v27_v9, 15  ;;  %v178_v10 = vpack.c.bf16 %v59_v8, %v58_v7  ;;  %v181_v16 = vpack.c.bf16 %v61_v14, %v60_v13  ;;  %v62_v19 = vld [vmem:[#allocation2 + $0x30] sm:$0xff]  ;;  %v63_v20 = vld [vmem:[#allocation2 + $0x38] sm:$0xff]  ;;  %171 = vmatprep.mubr.msk.f32.mxu0 %vm233_vm2, %v234_v23  ;;  %v31_v26 = vand.u32 127, %v30_v24 }
  0x16   :  { %176 = vmatpush3.bf16.msra.mxu0 %v175_v6  ;;  %v29_v11 = vsel %vm28_vm1, %v27_v9, 15  ;;  %v184_v22 = vpack.c.bf16 %v63_v20, %v62_v19  ;;  %vm64_vm9 = vcmask 523264  }
  0x17   :  { %177 = vmatprep.subr.bf16.mxu0 %v230_v2  ;;  %33 = vperm.xlu0 %196, %v29_v11   ;;  %v42_v12 = vadd.s32 32, %v29_v11  ;;  %v36_v15 = vadd.s32 16, %v29_v11  ;;  %v48_v17 = vadd.s32 48, %v29_v11 }
  0x19   :  { %44 = vperm.xlu1 %198, %v42_v12  }
  0x1a   :  { %179 = vmatpush3.bf16.msra.mxu0 %v178_v10 }
  0x1b   :  { %180 = vmatprep.subr.bf16.mxu0 %v230_v2  ;;  %197 = vset.pattern.permute.xlu0 %v231_v18 }
  0x1c   :  { %38 = vperm.xlu0 %197, %v36_v15  }
  0x1d   :  { %199 = vset.pattern.permute.xlu1 %v232_v21 }
  0x1e   :  { %182 = vmatpush3.bf16.msra.mxu0 %v181_v16  ;;  %50 = vperm.xlu1 %199, %v48_v17  }
  0x1f   :  { %183 = vmatprep.subr.bf16.mxu0 %v230_v2 }
  0x20   :  { %200 = vset.pattern.permute.xlu0 %v232_v21 }
  0x22   :  { %185 = vmatpush3.bf16.msra.mxu0 %v184_v22 }
  0x96   :  { %v34_v25 = vpop.permute.xlu0 %33 }
  0x97   :  { %vm35_vm3 = vcmp.eq.s32.totalorder %v31_v26, %v34_v25 }
  0x98   :  { %v45_v27 = vpop.permute.xlu1 %44 }
  0x99   :  { %vm46_vm5 = vcmp.eq.s32.totalorder %v31_v26, %v45_v27 }
  0x9b   :  { %v39_v28 = vpop.permute.xlu0 %38 }
  0x9c   :  { %vm40_vm4 = vcmp.eq.s32.totalorder %v31_v26, %v39_v28 }
  0x9d   :  { %vm41_vm6 = vmor %vm35_vm3, %vm40_vm4  ;;  %v51_v29 = vpop.permute.xlu1 %50 }
  0x9e   :  { %vm47_vm7 = vmor %vm41_vm6, %vm46_vm5  ;;  %vm52_vm8 = vcmp.eq.s32.totalorder %v31_v26, %v51_v29 }
  0x9f   :  { %vm53_vm10 = vmor %vm47_vm7, %vm52_vm8 }
  0xa0   :  { %v144_v30 = vsel %vm53_vm10, 1.0, %v234_v23 }
  0xa1   :  { %172 = vmatmul.mubr.msk.f32.vlgmr.msra.gmra.mrb[0].mxu0 %vm64_vm9, %v144_v30 }
 0x174   :  { %v134_v31 = vpop.f32.mrb[0].mxu0 }
 0x175   :  { %138 = vst [vmem:[%s270_s2] sm:$0xff] %v134_v31  ;;  %v173_v32 = vpop.f32.mrb[1].mxu0 }
 0x176   :  { %143 = vsyncpa [#allocation3], 1 }

</bundles_post_ra>
